<compile_context>
chip_gen: v5e
topology: v5e:2x2
jax: 0.10.0
libtpu: 0.0.40
codegen_flags: <defaults>
</compile_context>

<pallas_src>
import numpy as np
import jax
import jax.numpy as jnp
from jax.experimental import pallas as pl
from jax.experimental.pallas import tpu as pltpu

# ----------------------------- STFT config (small) -----------------------------
FILTER_LENGTH = 16
HOP_LENGTH = 4
WIN_LENGTH = 16
CUTOFF = FILTER_LENGTH // 2 + 1            # 9
PACK = 8                                   # frames per lane-dense row (8*16 = 128)
LANES = PACK * FILTER_LENGTH               # 128


# --------------------------- trace-time constants (numpy) ----------------------
def _hann_periodic(win_length):
    # scipy.signal.get_window('hann', N, fftbins=True)
    n = np.arange(win_length)
    return 0.5 - 0.5 * np.cos(2.0 * np.pi * n / win_length)


def make_stft_bases(filter_length, hop_length, win_length):
    """Deterministic construction matching STFT.__init__ (windowed Fourier bases)."""
    scale = filter_length / hop_length
    fourier_basis = np.fft.fft(np.eye(filter_length))
    cutoff = filter_length // 2 + 1
    fourier_basis = np.vstack(
        [np.real(fourier_basis[:cutoff, :]), np.imag(fourier_basis[:cutoff, :])]
    )  # (2C, F), float64
    forward_basis = fourier_basis.astype(np.float32)                       # (2C, F)
    inverse_basis = np.linalg.pinv(scale * fourier_basis).T.astype(np.float32)  # (2C, F)

    assert filter_length >= win_length
    fft_window = _hann_periodic(win_length)
    pad = filter_length - win_length                                       # pad_center
    fft_window = np.pad(fft_window, (pad // 2, pad - pad // 2)).astype(np.float32)

    forward_basis = forward_basis * fft_window[None, :]
    inverse_basis = inverse_basis * fft_window[None, :]
    return forward_basis, inverse_basis


def window_sumsquare(n_frames, hop_length, win_length, n_fft):
    """librosa-style sum-square window envelope (norm=None)."""
    n = n_fft + hop_length * (n_frames - 1)
    x = np.zeros(n, dtype=np.float32)
    win_sq = _hann_periodic(win_length).astype(np.float32) ** 2
    pad = n_fft - win_length
    win_sq = np.pad(win_sq, (pad // 2, pad - pad // 2))
    for i in range(n_frames):
        sample = i * hop_length
        x[sample:min(n, sample + n_fft)] += win_sq[: max(0, min(n_fft, n - sample))]
    return x


def _round_up(x, m):
    return ((x + m - 1) // m) * m


def _inverse_envelope(n_frames, f_len, hop, win_length):
    # window-sumsquare division + filter_length/hop scale folded into one vector.
    wss = window_sumsquare(n_frames, hop, win_length, f_len)
    tiny = np.finfo(np.float32).tiny
    return ((float(f_len) / hop) / np.where(wss > tiny, wss, 1.0)).astype(np.float32)


# ------------------------------- Pallas kernel ---------------------------------
def _stft_fused_kernel(frames_ref, c_ref, out_ref):
    """Single fused step: packed frames @ block-diagonal composed basis.

    frames_ref: (tm, 128)  f32  -- 8 frames of 16 samples per lane-dense row
    c_ref     : (128, 128) f32  -- 8x block-diag replicas of the composed (16,16)
                                   forward->recombine->inverse per-frame matrix
    out_ref   : (tm, 128)  f32  -- per-frame inverse-transform contributions
    """
    # magnitude*cos(phase) == real and magnitude*sin(phase) == imag exactly, so
    # forward conv1d + recombine + per-frame conv_transpose1d collapse into one
    # precomputed matrix; one MXU matmul, f32 accumulation, lane-dense I/O.
    out_ref[...] = jnp.dot(frames_ref[...], c_ref[...],
                           preferred_element_type=jnp.float32)


def stft_frames_pallas(frames_packed, c_block, tm):
    """(rows_pad, 128) packed frame rows -> (rows_pad, 128) inverse contributions."""
    rows_pad, lanes = frames_packed.shape
    return pl.pallas_call(
        _stft_fused_kernel,
        out_shape=jax.ShapeDtypeStruct((rows_pad, lanes), jnp.float32),
        grid=(rows_pad // tm,),
        in_specs=[
            pl.BlockSpec((tm, lanes), lambda i: (i, 0)),       # packed frame rows
            pl.BlockSpec((lanes, lanes), lambda i: (0, 0)),    # composed basis (invariant)
        ],
        out_specs=pl.BlockSpec((tm, lanes), lambda i: (i, 0)),
        compiler_params=pltpu.CompilerParams(
            # Independent row tiles: pipelined DMA/MXU overlap, and sharded
            # across the two TensorCores on v7x whenever grid >= 2.
            dimension_semantics=("parallel",),
            # Working set is ~2.3 MiB double-buffered at tm=1024; explicit cap
            # keeps headroom on v7x (64 MiB physical).
            vmem_limit_bytes=32 * 1024 * 1024,
        ),
    )(frames_packed, c_block)


# --------------------------- shared plain-JAX glue ------------------------------
def _frame_signal(x, pad, f_len, hop, n_frames):
    """Reflect-pad + frame (static hop-block slices + concat; no gather)."""
    b = x.shape[0]
    xp = jnp.pad(x, ((0, 0), (pad, pad)), mode="reflect")          # (B, P)
    padded_len = xp.shape[1]
    xb = xp.reshape(b, padded_len // hop, hop)                     # hop blocks
    ratio = f_len // hop
    frames = jnp.concatenate(
        [xb[:, j:j + n_frames, :] for j in range(ratio)], axis=-1)  # (B, T, F)
    return frames.reshape(b * n_frames, f_len)                      # (M, F)


def _overlap_add_and_finish(y_frames, b, n_frames, f_len, hop, num_samples, inv_env):
    """Hop-strided overlap-add + envelope multiply + center slice."""
    # TODO(synk): fold this overlap-add + envelope into the kernel to cut
    # output writeback 4x (review item 4).
    ratio = f_len // hop
    n_blocks_out = n_frames + ratio - 1
    contrib = y_frames.reshape(b, n_frames, ratio, hop)
    acc = jnp.zeros((b, n_blocks_out, hop), jnp.float32)
    for j in range(ratio):
        acc = acc + jnp.pad(contrib[:, :, j, :],
                            ((0, 0), (j, n_blocks_out - n_frames - j), (0, 0)))
    inverse_transform = acc.reshape(b, n_blocks_out * hop)
    inverse_transform = inverse_transform * jnp.asarray(inv_env)[None, :]
    pad = f_len // 2
    return inverse_transform[:, pad:pad + num_samples][:, None, :]   # (B, 1, N)


# ------------------------------- STFT forward ----------------------------------
def stft_forward(x):
    """Pallas TPU forward pass. x: (B, num_samples) f32 -> (B, 1, num_samples) f32."""
    b, num_samples = x.shape
    f_len, hop, wl = FILTER_LENGTH, HOP_LENGTH, WIN_LENGTH
    pad = f_len // 2
    assert num_samples % hop == 0, "num_samples must be a multiple of HOP_LENGTH"
    padded_len = num_samples + 2 * pad
    n_frames = (padded_len - f_len) // hop + 1                       # T

    # ---- trace-time constants (numpy; only O(filter^2) / O(n_out) sized) ------
    fwd, inv = make_stft_bases(f_len, hop, wl)                       # (2C, F) each
    c16 = (fwd.T @ inv).astype(np.float32)                           # composed (F, F)
    c_block = np.kron(np.eye(PACK, dtype=np.float32), c16)          # (128, 128) block-diag
    inv_env = _inverse_envelope(n_frames, f_len, hop, wl)            # (n_out,)

    # ---- framing (plain JAX; static slices + concat) ---------------------------
    # TODO(synk): move framing into the kernel (DMA raw padded signal, assemble
    # frame tiles in VMEM) to drop the 4x framed-signal HBM duplication.
    frames2d = _frame_signal(x, pad, f_len, hop, n_frames)           # (M, F) f32
    m = b * n_frames

    # ---- lane-dense packing: 8 frames per 128-lane row -------------------------
    m8 = -(-m // PACK)                                               # packed rows
    rows = _round_up(max(m8, 1), 8)                                  # sublane-aligned
    if rows <= 8:
        tm = rows                                                    # single block
    else:
        # large tiles (<=1024 rows = 8192 frames) but always >= 2 grid steps so
        # pipelining + v7x megacore sharding engage.
        tm = min(1024, _round_up((rows + 1) // 2, 8))
    rows_pad = _round_up(rows, tm)
    pad_frames = rows_pad * PACK - m
    if pad_frames:
        frames2d = jnp.pad(frames2d, ((0, pad_frames), (0, 0)))
    frames_packed = frames2d.reshape(rows_pad, LANES)                # (rows_pad, 128)

    # ---- fused forward-transform + recombine + per-frame inverse ---------------
    y = stft_frames_pallas(frames_packed, jnp.asarray(c_block), tm)  # (rows_pad, 128) f32
    y = y.reshape(rows_pad * PACK, f_len)[:m]                        # (M, F)

    return _overlap_add_and_finish(y, b, n_frames, f_len, hop, num_samples, inv_env)


def stft_forward_reference(x):
    """Pure-JAX f32 reference implementing the ORIGINAL module math step by step
    (conv1d-as-matmul, sqrt/atan2, cos/sin recombine, conv_transpose1d-as-matmul,
    overlap-add, window-sumsquare division, scale, center slice). No Pallas."""
    b, num_samples = x.shape
    f_len, hop, wl = FILTER_LENGTH, HOP_LENGTH, WIN_LENGTH
    pad = f_len // 2
    padded_len = num_samples + 2 * pad
    n_frames = (padded_len - f_len) // hop + 1

    fwd, inv = make_stft_bases(f_len, hop, wl)                       # (2C, F) each
    inv_env = _inverse_envelope(n_frames, f_len, hop, wl)

    frames2d = _frame_signal(x, pad, f_len, hop, n_frames)           # (M, F)
    hp = jax.lax.Precision.HIGHEST
    ft = jnp.dot(frames2d, jnp.asarray(fwd.T), precision=hp)         # (M, 2C)
    real, imag = ft[:, :CUTOFF], ft[:, CUTOFF:]
    magnitude = jnp.sqrt(real * real + imag * imag)
    phase = jnp.arctan2(imag, real)
    recomb = jnp.concatenate([magnitude * jnp.cos(phase),
                              magnitude * jnp.sin(phase)], axis=-1)  # (M, 2C)
    y = jnp.dot(recomb, jnp.asarray(inv), precision=hp)              # (M, F)

    return _overlap_add_and_finish(y, b, n_frames, f_len, hop, num_samples, inv_env)


# ----------------------------------- main ---------------------------------------
if __name__ == "__main__":
    key = jax.random.PRNGKey(0)
    batch, num_samples = 2, 64              # num_samples must be a multiple of HOP_LENGTH
    x = jax.random.normal(key, (batch, num_samples), dtype=jnp.float32)

    recon = jax.block_until_ready(jax.jit(stft_forward)(x))
    assert recon.shape == (batch, 1, num_samples), recon.shape
    assert recon.dtype == jnp.float32

    ref = jax.block_until_ready(jax.jit(stft_forward_reference)(x))
    max_err = float(jnp.max(jnp.abs(recon - ref)))
    # f32 operands + f32 accumulation: typical error ~1e-6; the 5e-2 headroom
    # only covers a possible reduced-precision MXU pass on some generations.
    assert max_err < 5e-2, max_err

    print("KERNEL_OK")
</pallas_src>

<mosaic_0001>
module attributes {stable_mosaic.version = 11 : i64} {
  func.func @_stft_fused_kernel(%arg0: i32, %arg1: memref<8x128xf32, #tpu.memory_space<vmem>>, %arg2: memref<128x128xf32, #tpu.memory_space<vmem>>, %arg3: memref<8x128xf32, #tpu.memory_space<vmem>>) attributes {dimension_semantics = [#tpu.dimension_semantics<parallel>], iteration_bounds = array<i64: 1>, scalar_prefetch = 0 : i64, scratch_operands = 0 : i64, tpu.core_type = #tpu.core_type<tc>, window_params = [{transform_indices = @transform_0, window_bounds = array<i64: 8, 128>}, {pipeline_mode = #tpu.pipeline_mode<synchronous>, transform_indices = @transform_1, window_bounds = array<i64: 128, 128>}, {transform_indices = @transform_2, window_bounds = array<i64: 8, 128>}]} {
    %c0 = arith.constant 0 : index
    %c0_0 = arith.constant 0 : index
    %0 = vector.load %arg1[%c0, %c0_0] : memref<8x128xf32, #tpu.memory_space<vmem>>, vector<8x128xf32>
    %c0_1 = arith.constant 0 : index
    %c0_2 = arith.constant 0 : index
    %1 = vector.load %arg2[%c0_1, %c0_2] : memref<128x128xf32, #tpu.memory_space<vmem>>, vector<128x128xf32>
    %cst = arith.constant dense<0.000000e+00> : vector<8x128xf32>
    %2 = tpu.matmul %0, %1, %cst {dimension_numbers = #tpu.dot_dimension_numbers<[1], [0], [0], [1], [0, 0, 1, 1], [], []>} : vector<8x128xf32>, vector<128x128xf32>, vector<8x128xf32> -> vector<8x128xf32>
    %c0_3 = arith.constant 0 : index
    %c0_4 = arith.constant 0 : index
    %3 = vector.load %arg3[%c0_3, %c0_4] : memref<8x128xf32, #tpu.memory_space<vmem>>, vector<8x128xf32>
    tpu.vector_store %arg3[%c0_3, %c0_4], %2 {strides = array<i32>} : memref<8x128xf32, #tpu.memory_space<vmem>>, vector<8x128xf32>,
    return
  }
  func.func @transform_0(%arg0: i32) -> (i32, i32) {
    %c0_i32 = arith.constant 0 : i32
    %c0_i32_0 = arith.constant 0 : i32
    return %arg0, %c0_i32 : i32, i32
  }
  func.func @transform_1(%arg0: i32) -> (i32, i32) {
    %c0_i32 = arith.constant 0 : i32
    %c0_i32_0 = arith.constant 0 : i32
    %c0_i32_1 = arith.constant 0 : i32
    return %c0_i32, %c0_i32_0 : i32, i32
  }
  func.func @transform_2(%arg0: i32) -> (i32, i32) {
    %c0_i32 = arith.constant 0 : i32
    %c0_i32_0 = arith.constant 0 : i32
    return %arg0, %c0_i32 : i32, i32
  }
}

</mosaic_0001>

<bundles_post_ra>
// kernel: stft_forward.1
= control target key start
LH: loop header
LB: loop body
LE: loop exit
PB: predicated region body
PF: predicated region fallthrough
CT: control target
= control target key end

     0   :  { %s122_s1 = inlined_call_operand.vmem [shape: f32[128,128], index: 1, kind: input, shape index: {}]   ;;  %s123_s0 = inlined_call_operand.vmem [shape: f32[8,128], index: 0, kind: input, shape index: {}]   ;;  %s124_s2 = inlined_call_operand.vmem [shape: f32[8,128], index: 2, kind: output, shape index: {}]  }
   0x1   :  { %v27_v0 = vld [vmem:[%s122_s1 + $0x78] sm:$0xff]  ;;  %v26_v1 = vld [vmem:[%s122_s1 + $0x70] sm:$0xff]  ;;  %v25_v2 = vld [vmem:[%s122_s1 + $0x68] sm:$0xff] }
   0x2   :  { %28 = vmatpush.msra.mxu0 %v27_v0  ;;  %v24_v3 = vld [vmem:[%s122_s1 + $0x60] sm:$0xff]  ;;  %v23_v4 = vld [vmem:[%s122_s1 + $0x58] sm:$0xff]  ;;  %v22_v5 = vld [vmem:[%s122_s1 + $0x50] sm:$0xff] }
   0x3   :  { %v21_v6 = vld [vmem:[%s122_s1 + $0x48] sm:$0xff]  ;;  %v20_v7 = vld [vmem:[%s122_s1 + $0x40] sm:$0xff]  ;;  %v19_v8 = vld [vmem:[%s122_s1 + $0x38] sm:$0xff] }
   0x4   :  { %29 = vmatpush.msra.mxu0 %v26_v1  ;;  %v18_v9 = vld [vmem:[%s122_s1 + $0x30] sm:$0xff]  ;;  %v17_v10 = vld [vmem:[%s122_s1 + $0x28] sm:$0xff]  ;;  %v16_v11 = vld [vmem:[%s122_s1 + $0x20] sm:$0xff] }
   0x5   :  { %v15_v12 = vld [vmem:[%s122_s1 + $0x18] sm:$0xff]  ;;  %v14_v13 = vld [vmem:[%s122_s1 + $0x10] sm:$0xff]  ;;  %v13_v14 = vld [vmem:[%s122_s1 + $0x8] sm:$0xff] }
   0x6   :  { %30 = vmatpush.msra.mxu0 %v25_v2  ;;  %v12_v15 = vld [vmem:[%s122_s1] sm:$0xff] }
   0x7   :  { %v11_v16 = vld [vmem:[%s123_s0] sm:$0xff] }
   0x8   :  { %31 = vmatpush.msra.mxu0 %v24_v3 }
   0xa   :  { %32 = vmatpush.msra.mxu0 %v23_v4 }
   0xc   :  { %33 = vmatpush.msra.mxu0 %v22_v5 }
   0xe   :  { %34 = vmatpush.msra.mxu0 %v21_v6 }
  0x10   :  { %35 = vmatpush.msra.mxu0 %v20_v7 }
  0x12   :  { %36 = vmatpush.msra.mxu0 %v19_v8 }
  0x14   :  { %37 = vmatpush.msra.mxu0 %v18_v9 }
  0x16   :  { %38 = vmatpush.msra.mxu0 %v17_v10 }
  0x18   :  { %39 = vmatpush.msra.mxu0 %v16_v11 }
  0x1a   :  { %40 = vmatpush.msra.mxu0 %v15_v12 }
  0x1c   :  { %41 = vmatpush.msra.mxu0 %v14_v13 }
  0x1e   :  { %42 = vmatpush.msra.mxu0 %v13_v14 }
  0x20   :  { %43 = vmatpush.msra.mxu0 %v12_v15 }
  0x21   :  { %44 = vmatmul.f32.vlgmr.msra.gmra.mxu0 %v11_v16 }
  0x9e   :  { %v45_v17 = vpop.f32.mrf.mxu0 }
  0x9f   :  { %48 = vst [vmem:[%s124_s2] sm:$0xff] %v45_v17 }

</bundles_post_ra>
